<compile_context>
chip_gen: v6e
topology: v6e:2x2x1
jax: 0.10.0
libtpu: 0.0.40
codegen_flags: <defaults>
</compile_context>

<pallas_src>
import functools
import math

import jax
import jax.numpy as jnp
from jax import lax
from jax.experimental import pallas as pl
from jax.experimental.pallas import tpu as pltpu

NEG_FILL = -10000000000.0   # matches torch masked_fill value
NEG_INIT = -1e30            # finite "minus infinity" for the running max


def _pick_tile(dim, max_tile, multiple):
    """Largest tile <= max_tile that divides `dim` and is a multiple of
    `multiple`; falls back to the full dim (correct, may cost VMEM)."""
    if dim <= max_tile:
        return dim
    t = (max_tile // multiple) * multiple
    while t >= multiple:
        if dim % t == 0:
            return t
        t -= multiple
    return dim


def _vmem_cap_bytes():
    """Upper bound for vmem_limit_bytes: physical VMEM minus headroom for Mosaic
    internal scratch / pipeline buffers (v7x: 64 MiB physical -> never ask for all
    of it).  Conservative fallback if the query is unavailable."""
    try:
        cap = int(pltpu.get_tpu_info().vmem_capacity_bytes)
        return max(cap - (16 << 20), 32 << 20)
    except Exception:
        return 48 << 20


# ---------------------------------------------------------------------------
# Fused flash attention (all heads) + residual add + LayerNorm
# ---------------------------------------------------------------------------

def _attn_ln_body(q_ref, kv_ref, x_ref, g_ref, beta_ref, mask_ref, o_ref,
                  m_sc, l_sc, acc_sc, *, num_heads, eps):
    ki = pl.program_id(2)
    nk = pl.num_programs(2)
    H = num_heads
    D = q_ref.shape[-1]
    P = D // H

    @pl.when(ki == 0)
    def _():
        m_sc[...] = jnp.full(m_sc.shape, NEG_INIT, dtype=m_sc.dtype)
        l_sc[...] = jnp.zeros(l_sc.shape, dtype=l_sc.dtype)
        acc_sc[...] = jnp.zeros(acc_sc.shape, dtype=acc_sc.dtype)

    if mask_ref is not None:
        neg = mask_ref[...] == 0                       # (tq, tk) bool, shared by heads

    # Static head loop: per-head (tq,P)x(P,tk) NT matmul; Q was pre-scaled by
    # 1/temperature in the projection.  (H is a small compile-time constant.)
    for h in range(H):
        qh = q_ref[:, h * P:(h + 1) * P]               # (tq, P)
        kh = kv_ref[:, h * P:(h + 1) * P]              # (tk, P)
        vh = kv_ref[:, D + h * P:D + (h + 1) * P]      # (tk, P)
        s = lax.dot_general(qh, kh,
                            dimension_numbers=(((1,), (1,)), ((), ())),
                            preferred_element_type=jnp.float32)     # (tq, tk) f32
        if mask_ref is not None:
            s = jnp.where(neg, jnp.float32(NEG_FILL), s)

        m_prev = m_sc[h]                                            # (tq, 1)
        m_new = jnp.maximum(m_prev, jnp.max(s, axis=-1, keepdims=True))
        alpha = jnp.exp(m_prev - m_new)                             # rescale old stats
        p = jnp.exp(s - m_new)                                      # (tq, tk)
        l_sc[h] = alpha * l_sc[h] + jnp.sum(p, axis=-1, keepdims=True)
        acc_sc[h] = alpha * acc_sc[h] + jnp.dot(
            p.astype(vh.dtype), vh, preferred_element_type=jnp.float32)
        m_sc[h] = m_new

    @pl.when(ki == nk - 1)
    def _():
        # normalize each head slab, merge lanes, then fused residual + LayerNorm
        slabs = []
        for h in range(H):
            inv_l = pl.reciprocal(l_sc[h], approx=True)             # EUP slot (~free)
            slabs.append(acc_sc[h] * inv_l)                         # (tq, P) f32
        attn = jnp.concatenate(slabs, axis=-1)                      # (tq, D) f32
        z = x_ref[...].astype(jnp.float32) + attn
        mu = jnp.mean(z, axis=-1, keepdims=True)
        c = z - mu
        var = jnp.mean(c * c, axis=-1, keepdims=True)
        inv = lax.rsqrt(var + eps)
        y = c * inv * g_ref[...].astype(jnp.float32) + beta_ref[...].astype(jnp.float32)
        o_ref[...] = y.astype(o_ref.dtype)                          # lane-dense store


def _attn_ln_kernel_nomask(q_ref, kv_ref, x_ref, g_ref, beta_ref, o_ref,
                           m_sc, l_sc, acc_sc, *, num_heads, eps):
    _attn_ln_body(q_ref, kv_ref, x_ref, g_ref, beta_ref, None, o_ref,
                  m_sc, l_sc, acc_sc, num_heads=num_heads, eps=eps)


def _attn_ln_kernel_mask(q_ref, kv_ref, x_ref, g_ref, beta_ref, mask_ref, o_ref,
                         m_sc, l_sc, acc_sc, *, num_heads, eps):
    _attn_ln_body(q_ref, kv_ref, x_ref, g_ref, beta_ref, mask_ref, o_ref,
                  m_sc, l_sc, acc_sc, num_heads=num_heads, eps=eps)


def attention_layernorm(q, kv, x, gamma, beta, masks=None, *, num_heads, eps=1e-5,
                        max_q_tile=512, max_k_tile=512):
    """q: [B, Lq, D] (already scaled by 1/temperature), kv: [B, Lk, 2D] = [K|V],
    x: [B, Lq, D] residual input, masks: [B, Lq, Lk] or None.
    Returns LayerNorm(x + MultiheadAttention(...)) -> [B, Lq, D]."""
    B, Lq, D = q.shape
    Lk = kv.shape[1]
    H = num_heads
    P = D // H

    # tq is also the sublane dim of the int8 mask tile -> multiple of 32 when masked.
    tq = _pick_tile(Lq, max_q_tile, 32 if masks is not None else 8)
    # tk is the lane dim of the score matrix / MXU N dim -> multiple of 128.
    tk = _pick_tile(Lk, max_k_tile, 128)
    grid = (B, Lq // tq, Lk // tk)   # v7x: B*(Lq//tq) parallel steps feed both TCs

    q_spec = pl.BlockSpec((None, tq, D), lambda b, qi, ki: (b, qi, 0))
    kv_spec = pl.BlockSpec((None, tk, 2 * D), lambda b, qi, ki: (b, ki, 0))
    x_spec = pl.BlockSpec((None, tq, D), lambda b, qi, ki: (b, qi, 0))
    g_spec = pl.BlockSpec((1, D), lambda b, qi, ki: (0, 0))
    b_spec = pl.BlockSpec((1, D), lambda b, qi, ki: (0, 0))
    o_spec = pl.BlockSpec((None, tq, D), lambda b, qi, ki: (b, qi, 0))

    scratch = [pltpu.VMEM((H, tq, 1), jnp.float32),   # running max per head
               pltpu.VMEM((H, tq, 1), jnp.float32),   # running denominator per head
               pltpu.VMEM((H, tq, P), jnp.float32)]   # running output per head

    # vmem_limit from the double-buffered tile footprint (+ headroom), capped
    # below physical VMEM (v7x-safe).
    qelem = jnp.dtype(q.dtype).itemsize
    xelem = jnp.dtype(x.dtype).itemsize
    tile_bytes = 2 * qelem * (tq * D + tk * 2 * D)          # q, kv (double-buffered)
    tile_bytes += 2 * xelem * (tq * D + 2 * D)              # x, gamma, beta
    tile_bytes += 2 * xelem * tq * D                        # output
    if masks is not None:
        tile_bytes += 2 * tq * tk                           # int8 mask tile
    tile_bytes += 4 * H * tq * (max(P, 128) + 2 * 128)      # f32 scratch (lane-padded)
    vmem_limit = int(min(max(tile_bytes + (8 << 20), 32 << 20), _vmem_cap_bytes()))

    compiler_params = pltpu.CompilerParams(
        dimension_semantics=("parallel", "parallel", "arbitrary"),
        vmem_limit_bytes=vmem_limit)

    out_shape = jax.ShapeDtypeStruct((B, Lq, D), x.dtype)

    if masks is None:
        kernel = functools.partial(_attn_ln_kernel_nomask, num_heads=H, eps=eps)
        return pl.pallas_call(
            kernel, out_shape=out_shape, grid=grid,
            in_specs=[q_spec, kv_spec, x_spec, g_spec, b_spec],
            out_specs=o_spec, scratch_shapes=scratch,
            compiler_params=compiler_params,
        )(q, kv, x, gamma, beta)
    else:
        masks_i8 = (masks != 0).astype(jnp.int8)   # `!= 0` first: no int8 wraparound
        m_spec = pl.BlockSpec((None, tq, tk), lambda b, qi, ki: (b, qi, ki))
        kernel = functools.partial(_attn_ln_kernel_mask, num_heads=H, eps=eps)
        return pl.pallas_call(
            kernel, out_shape=out_shape, grid=grid,
            in_specs=[q_spec, kv_spec, x_spec, g_spec, b_spec, m_spec],
            out_specs=o_spec, scratch_shapes=scratch,
            compiler_params=compiler_params,
        )(q, kv, x, gamma, beta, masks_i8)


# ---------------------------------------------------------------------------
# Linear projection (x @ W + b), tiled over rows / Dout / Din
# ---------------------------------------------------------------------------

def _linear_kernel(x_ref, w_ref, b_ref, o_ref, acc_ref):
    k = pl.program_id(2)

    @pl.when(k == 0)
    def _():
        acc_ref[...] = jnp.zeros_like(acc_ref)

    acc_ref[...] += jnp.dot(x_ref[...], w_ref[...], preferred_element_type=jnp.float32)

    @pl.when(k == pl.num_programs(2) - 1)
    def _():
        o_ref[...] = (acc_ref[...] + b_ref[...].astype(jnp.float32)).astype(o_ref.dtype)


def linear(x2d, w, b2d, *, out_dtype=None, max_row_tile=512, max_col_tile=512,
           max_k_tile=1024):
    """x2d: [M, Din] @ w: [Din, Dout] + b2d: [1, Dout] -> [M, Dout] (out_dtype)."""
    M, Din = x2d.shape
    Dout = w.shape[1]
    out_dtype = x2d.dtype if out_dtype is None else out_dtype
    tm = _pick_tile(M, max_row_tile, 8)
    tn = _pick_tile(Dout, max_col_tile, 128)
    tk = _pick_tile(Din, max_k_tile, 128)
    grid = (M // tm, Dout // tn, Din // tk)

    elem = jnp.dtype(x2d.dtype).itemsize
    oelem = jnp.dtype(out_dtype).itemsize
    tile_bytes = 2 * elem * (tm * tk + tk * tn + tn) + 2 * oelem * tm * tn + 4 * tm * tn
    vmem_limit = int(min(max(tile_bytes + (8 << 20), 32 << 20), _vmem_cap_bytes()))

    return pl.pallas_call(
        _linear_kernel,
        out_shape=jax.ShapeDtypeStruct((M, Dout), out_dtype),
        grid=grid,
        in_specs=[pl.BlockSpec((tm, tk), lambda i, j, k: (i, k)),
                  pl.BlockSpec((tk, tn), lambda i, j, k: (k, j)),
                  pl.BlockSpec((1, tn), lambda i, j, k: (0, j))],
        out_specs=pl.BlockSpec((tm, tn), lambda i, j, k: (i, j)),
        scratch_shapes=[pltpu.VMEM((tm, tn), jnp.float32)],
        compiler_params=pltpu.CompilerParams(
            dimension_semantics=("parallel", "parallel", "arbitrary"),
            vmem_limit_bytes=vmem_limit),
    )(x2d, w, b2d)


# ---------------------------------------------------------------------------
# CrossAttentionBlock forward
# ---------------------------------------------------------------------------

def cross_attention_block(x, y, params, masks=None, *, eps=1e-5, compute_dtype=None):
    """x: [B, N, D], y: [B, M, D], masks: [B, N, M] or None.
    Returns LayerNorm(x + MultiheadAttention(x, y, y, masks)) -> [B, N, D].
    `compute_dtype=jnp.bfloat16` runs both attention matmuls on the bf16 MXU path
    (v6e/v7x) with f32 accumulation; default keeps the input dtype."""
    b, n, d = x.shape
    _, m, _ = y.shape
    h = params["num_heads"]
    assert d % h == 0
    p = d // h
    scale = 1.0 / (p ** 0.5)

    proj_dtype = x.dtype if compute_dtype is None else compute_dtype

    # Fold 1/temperature into the Q projection (applied exactly once per element).
    wq = params["wq"] * scale
    bq = params["bq"] * scale
    # Fused K|V projection weight: y is streamed from HBM once.
    w_kv = jnp.concatenate([params["wk"], params["wv"]], axis=1)   # (d, 2d)
    b_kv = jnp.concatenate([params["bk"], params["bv"]], axis=1)   # (1, 2d)

    q = linear(x.reshape(b * n, d), wq, bq, out_dtype=proj_dtype).reshape(b, n, d)
    kv = linear(y.reshape(b * m, d), w_kv, b_kv,
                out_dtype=proj_dtype).reshape(b, m, 2 * d)

    # TODO(synk): for toy shapes the Q/KV projections could also be folded into
    # the attention kernel (everything fits in one VMEM tile).
    return attention_layernorm(q, kv, x, params["gamma"], params["beta"], masks,
                               num_heads=h, eps=eps)


# ---------------------------------------------------------------------------
# Pure-JAX reference (mirrors the PyTorch module exactly)
# ---------------------------------------------------------------------------

def _reference_cross_attention_block(x, y, params, masks=None, eps=1e-5):
    b, n, d = x.shape
    _, m, _ = y.shape
    h = params["num_heads"]
    p = d // h
    q = x @ params["wq"] + params["bq"]
    k = y @ params["wk"] + params["bk"]
    v = y @ params["wv"] + params["bv"]
    qh = q.reshape(b, n, h, p).transpose(2, 0, 1, 3).reshape(h * b, n, p)
    kh = k.reshape(b, m, h, p).transpose(2, 0, 1, 3).reshape(h * b, m, p)
    vh = v.reshape(b, m, h, p).transpose(2, 0, 1, 3).reshape(h * b, m, p)
    s = jnp.einsum("bqd,bkd->bqk", qh, kh) / (p ** 0.5)
    if masks is not None:
        mm = jnp.tile(masks[None], (h, 1, 1, 1)).reshape(h * b, n, m)
        s = jnp.where(mm == 0, NEG_FILL, s)
    a = jax.nn.softmax(s, axis=2)
    o = jnp.einsum("bqk,bkd->bqd", a, vh)
    o = o.reshape(h, b, n, p).transpose(1, 2, 0, 3).reshape(b, n, d)
    z = x + o
    mu = z.mean(-1, keepdims=True)
    var = ((z - mu) ** 2).mean(-1, keepdims=True)
    return (z - mu) / jnp.sqrt(var + eps) * params["gamma"] + params["beta"]


if __name__ == "__main__":
    key = jax.random.PRNGKey(0)
    keys = jax.random.split(key, 10)

    B, N, M, D, H = 2, 8, 8, 32, 4      # x: [2, 8, 32], y: [2, 8, 32]
    x = jax.random.normal(keys[0], (B, N, D), dtype=jnp.float32)
    y = jax.random.normal(keys[1], (B, M, D), dtype=jnp.float32)
    masks = (jax.random.uniform(keys[2], (B, N, M)) > 0.2).astype(jnp.int32)

    w_scale = 1.0 / math.sqrt(D)
    params = {
        "num_heads": H,
        "wq": jax.random.normal(keys[3], (D, D), jnp.float32) * w_scale,
        "bq": jax.random.normal(keys[4], (1, D), jnp.float32) * 0.1,
        "wk": jax.random.normal(keys[5], (D, D), jnp.float32) * w_scale,
        "bk": jax.random.normal(keys[6], (1, D), jnp.float32) * 0.1,
        "wv": jax.random.normal(keys[7], (D, D), jnp.float32) * w_scale,
        "bv": jax.random.normal(keys[8], (1, D), jnp.float32) * 0.1,
        "gamma": 1.0 + 0.1 * jax.random.normal(keys[9], (1, D), jnp.float32),
        "beta": jnp.zeros((1, D), jnp.float32),
    }

    # no-mask path (masks=None, the PyTorch default)
    out = cross_attention_block(x, y, params, masks=None)
    out = jax.block_until_ready(out)
    ref = _reference_cross_attention_block(x, y, params, masks=None)
    assert out.shape == (B, N, D)
    assert jnp.allclose(out, ref, atol=2e-2, rtol=2e-2), "no-mask mismatch"

    # masked path
    out_m = cross_attention_block(x, y, params, masks=masks)
    out_m = jax.block_until_ready(out_m)
    ref_m = _reference_cross_attention_block(x, y, params, masks=masks)
    assert jnp.allclose(out_m, ref_m, atol=2e-2, rtol=2e-2), "mask mismatch"

    # bf16-operand fast path (native MXU dtype on v6e/v7x); looser tolerance for
    # bf16 rounding of Q/K/V.
    out_bf = cross_attention_block(x, y, params, masks=masks,
                                   compute_dtype=jnp.bfloat16)
    out_bf = jax.block_until_ready(out_bf)
    assert jnp.allclose(out_bf, ref_m, atol=1e-1, rtol=1e-1), "bf16 path mismatch"

    print("KERNEL_OK")
</pallas_src>

<mosaic_0001>
module attributes {stable_mosaic.version = 11 : i64} {
  func.func @_linear_kernel(%arg0: i32, %arg1: i32, %arg2: i32, %arg3: memref<16x32xf32, #tpu.memory_space<vmem>>, %arg4: memref<32x32xf32, #tpu.memory_space<vmem>>, %arg5: memref<1x32xf32, #tpu.memory_space<vmem>>, %arg6: memref<16x32xf32, #tpu.memory_space<vmem>>, %arg7: memref<16x32xf32, #tpu.memory_space<vmem>>) attributes {dimension_semantics = [#tpu.dimension_semantics<parallel>, #tpu.dimension_semantics<parallel>, #tpu.dimension_semantics<arbitrary>], iteration_bounds = array<i64: 1, 1, 1>, scalar_prefetch = 0 : i64, scratch_operands = 1 : i64, tpu.core_type = #tpu.core_type<tc>, window_params = [{transform_indices = @transform_0, window_bounds = array<i64: 16, 32>}, {transform_indices = @transform_1, window_bounds = array<i64: 32, 32>}, {transform_indices = @transform_2, window_bounds = array<i64: 1, 32>}, {transform_indices = @transform_3, window_bounds = array<i64: 16, 32>}]} {
    %c0_i32 = arith.constant 0 : i32
    %0 = arith.cmpi eq, %arg2, %c0_i32 : i32
    %1 = arith.extui %0 : i1 to i32
    %c0_i32_0 = arith.constant 0 : i32
    %2 = arith.cmpi ne, %1, %c0_i32_0 : i32
    scf.if %2 {
      %cst_10 = arith.constant 0.000000e+00 : f32
      %12 = vector.broadcast %cst_10 : f32 to vector<16x32xf32>
      %c0_11 = arith.constant 0 : index
      %c0_12 = arith.constant 0 : index
      %13 = vector.load %arg7[%c0_11, %c0_12] : memref<16x32xf32, #tpu.memory_space<vmem>>, vector<16x32xf32>
      tpu.vector_store %arg7[%c0_11, %c0_12], %12 {strides = array<i32>} : memref<16x32xf32, #tpu.memory_space<vmem>>, vector<16x32xf32>,
    } else {
    }
    %c0 = arith.constant 0 : index
    %c0_1 = arith.constant 0 : index
    %3 = vector.load %arg7[%c0, %c0_1] : memref<16x32xf32, #tpu.memory_space<vmem>>, vector<16x32xf32>
    %c0_2 = arith.constant 0 : index
    %c0_3 = arith.constant 0 : index
    %4 = vector.load %arg3[%c0_2, %c0_3] : memref<16x32xf32, #tpu.memory_space<vmem>>, vector<16x32xf32>
    %c0_4 = arith.constant 0 : index
    %c0_5 = arith.constant 0 : index
    %5 = vector.load %arg4[%c0_4, %c0_5] : memref<32x32xf32, #tpu.memory_space<vmem>>, vector<32x32xf32>
    %cst = arith.constant dense<0.000000e+00> : vector<16x32xf32>
    %6 = tpu.matmul %4, %5, %cst {dimension_numbers = #tpu.dot_dimension_numbers<[1], [0], [0], [1], [0, 0, 1, 1], [], []>} : vector<16x32xf32>, vector<32x32xf32>, vector<16x32xf32> -> vector<16x32xf32>
    %7 = arith.addf %3, %6 : vector<16x32xf32>
    %c0_6 = arith.constant 0 : index
    %c0_7 = arith.constant 0 : index
    %8 = vector.load %arg7[%c0_6, %c0_7] : memref<16x32xf32, #tpu.memory_space<vmem>>, vector<16x32xf32>
    tpu.vector_store %arg7[%c0_6, %c0_7], %7 {strides = array<i32>} : memref<16x32xf32, #tpu.memory_space<vmem>>, vector<16x32xf32>,
    %c0_i32_8 = arith.constant 0 : i32
    %9 = arith.cmpi eq, %arg2, %c0_i32_8 : i32
    %10 = arith.extui %9 : i1 to i32
    %c0_i32_9 = arith.constant 0 : i32
    %11 = arith.cmpi ne, %10, %c0_i32_9 : i32
    scf.if %11 {
      %c0_10 = arith.constant 0 : index
      %c0_11 = arith.constant 0 : index
      %12 = vector.load %arg7[%c0_10, %c0_11] : memref<16x32xf32, #tpu.memory_space<vmem>>, vector<16x32xf32>
      %c0_12 = arith.constant 0 : index
      %c0_13 = arith.constant 0 : index
      %13 = vector.load %arg5[%c0_12, %c0_13] : memref<1x32xf32, #tpu.memory_space<vmem>>, vector<1x32xf32>
      %14 = vector.broadcast %13 : vector<1x32xf32> to vector<16x32xf32>
      %15 = arith.addf %12, %14 : vector<16x32xf32>
      %c0_14 = arith.constant 0 : index
      %c0_15 = arith.constant 0 : index
      %16 = vector.load %arg6[%c0_14, %c0_15] : memref<16x32xf32, #tpu.memory_space<vmem>>, vector<16x32xf32>
      tpu.vector_store %arg6[%c0_14, %c0_15], %15 {strides = array<i32>} : memref<16x32xf32, #tpu.memory_space<vmem>>, vector<16x32xf32>,
    } else {
    }
    return
  }
  func.func @transform_0(%arg0: i32, %arg1: i32, %arg2: i32) -> (i32, i32) {
    %c0_i32 = arith.constant 0 : i32
    return %arg0, %arg2 : i32, i32
  }
  func.func @transform_1(%arg0: i32, %arg1: i32, %arg2: i32) -> (i32, i32) {
    %c0_i32 = arith.constant 0 : i32
    return %arg2, %arg1 : i32, i32
  }
  func.func @transform_2(%arg0: i32, %arg1: i32, %arg2: i32) -> (i32, i32) {
    %c0_i32 = arith.constant 0 : i32
    %c0_i32_0 = arith.constant 0 : i32
    return %c0_i32, %arg1 : i32, i32
  }
  func.func @transform_3(%arg0: i32, %arg1: i32, %arg2: i32) -> (i32, i32) {
    %c0_i32 = arith.constant 0 : i32
    return %arg0, %arg1 : i32, i32
  }
}

</mosaic_0001>

<bundles_post_ra>
// kernel: tpu_custom_call.1
= control target key start
LH: loop header
LB: loop body
LE: loop exit
PB: predicated region body
PF: predicated region fallthrough
CT: control target
= control target key end

     0   :  { %8 = vsyncpa [#allocation4], 0  ;;  %s325_s0 = inlined_call_operand.hbm [shape: f32[16,32], index: 0, kind: input, shape index: {}]   ;;  %s326_s1 = inlined_call_operand.hbm [shape: f32[32,32], index: 1, kind: input, shape index: {}]   ;;  %s327_s2 = inlined_call_operand.vmem [shape: f32[1,32], index: 2, kind: input, shape index: {}]   ;;  %s328_s3 = inlined_call_operand.hbm [shape: f32[16,32], index: 3, kind: output, shape index: {}]  }
   0x1   :  { %9 = vsyncpa [#allocation7], 0 }
   0x2   :  { %10 = vsyncpa [#allocation5], 0  ;;  %s270_s12 = smov [#allocation3]  }
   0x3   :  { %s16_s13 = sshll.u32 %s270_s12, 4  ;;  %s17_s13 = int_to_ptr.vmem [resolvable:$true] %s16_s13 }
   0x4   :  { %s212_s14 = scalar_lea.vmem %s17_s13, 256  ;;  %p217_p1 = scmp.lt.s32.totalorder %s17_s13, %s17_s13 }
   0x5   :  { %p213_p0 = scmp.ne.s32.totalorder %s17_s13, %s212_s14  ;;  %p218_p2 = scmp.lt.s32.totalorder %s212_s14, %s212_s14 }
   0x7   :  { %p219_p3 = por %p218_p2, %p217_p1 }
   0x9   :  { %p220_p4 = pnand %p219_p3, %p213_p0 }
   0xb   :  { %223 = shalt.err (!%p220_p4)
}
   0xc   :  { %s271_s15 = smov 128   ;;  %s272_s16 = smov 8  }
   0xd   :  { %22 = dma.hbm_to_vmem [thread:$0]  %s325_s0, 256, %s17_s13, [#allocation4], %s271_s15, %s271_s15, %s272_s16  }
   0xe   :  { %s273_s19 = smov [#allocation6]  }
   0xf   :  { %s28_s20 = sshll.u32 %s273_s19, 4  ;;  %s29_s20 = int_to_ptr.vmem [resolvable:$true] %s28_s20 }
  0x10   :  { %s232_s21 = scalar_lea.vmem %s29_s20, 512  ;;  %p237_p6 = scmp.lt.s32.totalorder %s29_s20, %s29_s20 }
  0x11   :  { %p233_p5 = scmp.ne.s32.totalorder %s29_s20, %s232_s21  ;;  %p238_p7 = scmp.lt.s32.totalorder %s232_s21, %s232_s21 }
  0x13   :  { %p239_p8 = por %p238_p7, %p237_p6 }
  0x15   :  { %p240_p9 = pnand %p239_p8, %p233_p5 }
  0x17   :  { %243 = shalt.err (!%p240_p9)
}
  0x18   :  { %34 = dma.hbm_to_vmem [thread:$0]  %s326_s1, 512, %s29_s20, [#allocation7], %s271_s15, %s271_s15, %s272_s16  }
  0x19   :  { %264 = dma.done.wait [#allocation4], 256  }
  0x1a   :  { %265 = vsyncadd [#allocation4], 4294967040 }
  0x1b   :  { %266 = dma.done.wait [#allocation7], 512  }
  0x1c   :  { %267 = vsyncadd [#allocation7], 4294966784  ;;  %vm47_vm0 = vcmask 261120   ;;  %v274_v0 = vmov 0.0   ;;  %v57_v1 = vld [vmem:[#allocation6 + $0x18] sm:$0xff]  ;;  %v56_v2 = vld [vmem:[#allocation6 + $0x10] sm:$0xff] }
  0x1d   :  { %49 = vst.msk [vmem:[#allocation2 + $0x8] sm:$0xff] %vm47_vm0, %v274_v0  ;;  %48 = vst.msk [vmem:[#allocation2] sm:$0xff] %vm47_vm0, %v274_v0  ;;  %187 = vmatprep.subr.mxu0 %v57_v1  ;;  %v52_v3 = vld [vmem:[#allocation3] sm:$0xff]  ;;  %v55_v4 = vld [vmem:[#allocation6 + $0x8] sm:$0xff]  ;;  %s275_s24 = smov [#allocation8]  }
  0x1e   :  { %188 = vmatpush3.msra.mxu0 %v57_v1  ;;  %195 = vmatprep.mubr.msk.f32.mxu0 %vm47_vm0, %v52_v3  ;;  %v54_v5 = vld [vmem:[#allocation6] sm:$0xff]  ;;  %v53_v6 = vld [vmem:[#allocation3 + $0x8] sm:$0xff]  ;;  %s165_s25 = sshll.u32 %s275_s24, 4  ;;  %s166_s25 = int_to_ptr.vmem [resolvable:$true] %s165_s25 }
  0x1f   :  { %189 = vmatprep.subr.mxu0 %v56_v2  ;;  %v180_v13 = vld [vmem:[%s327_s2] ss:$0 sm:$0xff]  ;;  %s244_s26 = scalar_lea.vmem %s166_s25, 256  ;;  %p249_p11 = scmp.lt.s32.totalorder %s166_s25, %s166_s25 }
  0x20   :  { %190 = vmatpush3.msra.mxu0 %v56_v2  ;;  %p245_p10 = scmp.ne.s32.totalorder %s166_s25, %s244_s26  ;;  %p250_p12 = scmp.lt.s32.totalorder %s244_s26, %s244_s26 }
  0x21   :  { %191 = vmatprep.subr.mxu0 %v55_v4 }
  0x22   :  { %192 = vmatpush3.msra.mxu0 %v55_v4  ;;  %p251_p13 = por %p250_p12, %p249_p11 }
  0x23   :  { %193 = vmatprep.subr.mxu0 %v54_v5 }
  0x24   :  { %194 = vmatpush3.msra.mxu0 %v54_v5  ;;  %v51_v7 = vld [vmem:[#allocation2 + $0x8] sm:$0xff]  ;;  %v50_v9 = vld [vmem:[#allocation2] sm:$0xff]  ;;  %p252_p0 = pnand %p251_p13, %p245_p10 }
  0x25   :  { %196 = vmatmul.mubr.msk.f32.vlgmr.msra.gmra.mxu0 %vm47_vm0, %v53_v6 }
  0xe5   :  { %v197_v8 = vpop.f32.mrf.mxu0 }
  0xe6   :  { %v141_v10 = vadd.f32 %v197_v8, %v51_v7 }
  0xe7   :  { %v131_v11 = vpop.f32.mrf.mxu0 }
  0xe8   :  { %143 = vst.msk [vmem:[#allocation2 + $0x8] sm:$0xff] %vm47_vm0, %v141_v10  ;;  %v140_v12 = vadd.f32 %v131_v11, %v50_v9 }
  0xea   :  { %142 = vst.msk [vmem:[#allocation2] sm:$0xff] %vm47_vm0, %v140_v12 }
  0xef   :  { %v148_v14 = vld [vmem:[#allocation2 + $0x8] sm:$0xff] }
  0xf0   :  { %v157_v15 = vadd.f32 %v180_v13, %v148_v14 }
  0xf1   :  { %v147_v16 = vld [vmem:[#allocation2] sm:$0xff] }
  0xf2   :  { %v156_v17 = vadd.f32 %v180_v13, %v147_v16  ;;  %159 = vst.msk [vmem:[#allocation8 + $0x8] sm:$0xff] %vm47_vm0, %v157_v15 }
  0xf4   :  { %158 = vst.msk [vmem:[#allocation8] sm:$0xff] %vm47_vm0, %v156_v17 }
  0xf5   :  { %255 = shalt.err (!%p252_p0)
}
  0xf6   :  { %171 = dma.vmem_to_hbm [thread:$0]  %s166_s25, 256, %s328_s3, [#allocation5], %s271_s15, %s271_s15, %s272_s16  }
  0xf7   :  { %268 = dma.done.wait [#allocation5], 256  }
  0xf8   :  { %269 = vsyncadd [#allocation5], 4294967040 }
  0xf9   :  { %175 = vsyncpa [#allocation4], 1 }
  0xfa   :  { %176 = vsyncpa [#allocation7], 1 }
  0xfb   :  { %177 = vsyncpa [#allocation5], 1 }

</bundles_post_ra>
